<compile_context>
chip_gen: v6e
topology: v6e:2x2x1
jax: 0.10.0
libtpu: 0.0.40
codegen_flags: <defaults>
</compile_context>

<pallas_src>
import functools

import jax
import jax.numpy as jnp
from jax import lax
from jax.experimental import pallas as pl
from jax.experimental.pallas import tpu as pltpu

K = 3  # 3x3 convs, padding=1 (kernel_size=3, dilation=1)


def _shift_spatial(v, d):
    """y[:, p] = v[:, p + d] if 0 <= p + d < P else 0 (d is a static int)."""
    C, P = v.shape
    if d == 0:
        return v
    if d > 0:
        return jnp.concatenate([v[:, d:], jnp.zeros((C, d), v.dtype)], axis=1)
    return jnp.concatenate([jnp.zeros((C, -d), v.dtype), v[:, :P + d]], axis=1)


def _im2col(v, lmask, rmask, W):
    """Build the (9*C, P) patch matrix for a 3x3 / pad=1 conv.

    v      : (C, P) activation, P = H*W flattened row-major (spatial on lanes)
    lmask  : (1, P) f32, 1.0 where column index >= 1     (left border mask)
    rmask  : (1, P) f32, 1.0 where column index <= W - 2 (right border mask)

    The zero fill in _shift_spatial handles the top/bottom image borders; only
    the left/right borders (row wrap of the flattened spatial axis) need masks.
    Row order is tap-major ((kh, kw) row-major), channel-minor, matching the
    reshape of an HWIO weight to (9*C, Cout).
    """
    pieces = []
    for kh in range(K):
        for kw in range(K):
            d = (kh - 1) * W + (kw - 1)
            s = _shift_spatial(v, d)
            if kw == 0:
                s = s * lmask
            elif kw == 2:
                s = s * rmask
            pieces.append(s)
    return jnp.concatenate(pieces, axis=0)  # (9*C, P)


def _residual_conv_kernel(x_ref, masks_ref, w1_ref, b1_ref, w2_ref, b2_ref,
                          wsk_ref, bsk_ref, o_ref, *, W):
    # x_ref   : (1, Cpad, P)    input image (channels zero-padded to 8)
    # masks_ref: (2, P)         row 0 = left-valid mask, row 1 = right-valid
    # w1_ref  : (Cout, 9*Cpad)  conv1 weight, BN1 scale folded in
    # b1_ref  : (Cout, 1)       folded BN1 shift
    # w2_ref  : (Cout, 9*Cout)  conv2 weight, BN2 scale folded in
    # b2_ref  : (Cout, 1)       folded BN2 shift
    # wsk_ref : (Cout, Cpad)    1x1 skip-conv weight (padded input channels)
    # bsk_ref : (Cout, 1)       skip-conv bias
    # o_ref   : (1, Cout, P)    lane-dense output
    x = x_ref[0]                                   # (Cpad, P)
    masks = masks_ref[...]
    lmask = masks[0:1, :]                          # (1, P)
    rmask = masks[1:2, :]                          # (1, P)

    # ---- block 1: Conv3x3 (BN1 scale folded) -> shift -> SiLU ----
    patches1 = _im2col(x, lmask, rmask, W)         # (9*Cpad, P)
    h1 = jnp.dot(w1_ref[...], patches1,
                 preferred_element_type=jnp.float32) + b1_ref[...]
    h1 = h1 * jax.nn.sigmoid(h1)                   # SiLU, (Cout, P)

    # ---- block 2: Conv3x3 (BN2 scale folded) -> shift -> SiLU ----
    patches2 = _im2col(h1, lmask, rmask, W)        # (9*Cout, P)
    h2 = jnp.dot(w2_ref[...], patches2,
                 preferred_element_type=jnp.float32) + b2_ref[...]
    h2 = h2 * jax.nn.sigmoid(h2)                   # (Cout, P)

    # ---- skip path: 1x1 conv with bias (in_channels != out_channels) ----
    skip = jnp.dot(wsk_ref[...], x,
                   preferred_element_type=jnp.float32) + bsk_ref[...]

    o_ref[0] = skip + h2                           # unmasked lane-dense store


def residual_conv(x_nchw, params):
    """ResidualConv forward. x_nchw: (N, Cin, H, W) -> (N, Cout, H, W)."""
    N, Cin, H, W = x_nchw.shape
    Cout = params["w1"].shape[-1]
    P = H * W
    Cpad = 8          # pad input channels to one full sublane tile
    eps = 1e-5

    # Fold BN (inference mode): scale goes into the conv weights, shift stays.
    s1 = params["bn1_gamma"] / jnp.sqrt(params["bn1_var"] + eps)
    b1 = params["bn1_beta"] - params["bn1_mean"] * s1
    s2 = params["bn2_gamma"] / jnp.sqrt(params["bn2_var"] + eps)
    b2 = params["bn2_beta"] - params["bn2_mean"] * s2

    w1f = params["w1"] * s1                                       # (3,3,Cin,Cout)
    w1p = jnp.zeros((K, K, Cpad, Cout), jnp.float32).at[:, :, :Cin, :].set(w1f)
    w1mat = w1p.reshape(K * K * Cpad, Cout).T                     # (Cout, 9*Cpad)

    w2f = params["w2"] * s2                                       # (3,3,Cout,Cout)
    w2mat = w2f.reshape(K * K * Cout, Cout).T                     # (Cout, 9*Cout)

    wskp = jnp.zeros((Cpad, Cout), jnp.float32).at[:Cin, :].set(params["wsk"])
    wskmat = wskp.T                                               # (Cout, Cpad)

    # Left/right image-border masks along the flattened spatial axis.
    col = jnp.arange(P, dtype=jnp.int32) % W
    masks = jnp.stack([(col >= 1).astype(jnp.float32),
                       (col <= W - 2).astype(jnp.float32)], axis=0)  # (2, P)

    # NCHW -> (N, C, H*W) is a free view reshape (no transposes, no padding).
    x_flat = x_nchw.reshape(N, Cin, P).astype(jnp.float32)
    x_pad = jnp.zeros((N, Cpad, P), jnp.float32).at[:, :Cin, :].set(x_flat)

    kernel = functools.partial(_residual_conv_kernel, W=W)
    out_flat = pl.pallas_call(
        kernel,
        out_shape=jax.ShapeDtypeStruct((N, Cout, P), jnp.float32),
        grid_spec=pltpu.PrefetchScalarGridSpec(
            num_scalar_prefetch=0,
            grid=(N,),
            in_specs=[
                pl.BlockSpec((1, Cpad, P), lambda n: (n, 0, 0)),
                pl.BlockSpec((2, P), lambda n: (0, 0)),
                pl.BlockSpec((Cout, K * K * Cpad), lambda n: (0, 0)),
                pl.BlockSpec((Cout, 1), lambda n: (0, 0)),
                pl.BlockSpec((Cout, K * K * Cout), lambda n: (0, 0)),
                pl.BlockSpec((Cout, 1), lambda n: (0, 0)),
                pl.BlockSpec((Cout, Cpad), lambda n: (0, 0)),
                pl.BlockSpec((Cout, 1), lambda n: (0, 0)),
            ],
            out_specs=pl.BlockSpec((1, Cout, P), lambda n: (n, 0, 0)),
        ),
        compiler_params=pltpu.CompilerParams(
            dimension_semantics=("parallel",)),   # batch axis -> 2 TCs on v7x
    )(x_pad, masks,
      w1mat, b1.reshape(Cout, 1),
      w2mat, b2.reshape(Cout, 1),
      wskmat, params["bsk"].reshape(Cout, 1))

    return out_flat.reshape(N, Cout, H, W)


def reference_forward(x_nchw, params):
    """Pure-JAX reference (same semantics as the torch module, eval-mode BN)."""
    eps = 1e-5
    Cin = x_nchw.shape[1]
    Cout = params["w1"].shape[-1]
    s1 = params["bn1_gamma"] / jnp.sqrt(params["bn1_var"] + eps)
    b1 = params["bn1_beta"] - params["bn1_mean"] * s1
    s2 = params["bn2_gamma"] / jnp.sqrt(params["bn2_var"] + eps)
    b2 = params["bn2_beta"] - params["bn2_mean"] * s2

    x = jnp.transpose(x_nchw, (0, 2, 3, 1)).astype(jnp.float32)

    def conv(v, w, pad):
        return lax.conv_general_dilated(
            v, w, (1, 1), [(pad, pad), (pad, pad)],
            dimension_numbers=("NHWC", "HWIO", "NHWC"))

    def silu(v):
        return v * jax.nn.sigmoid(v)

    h = silu(conv(x, params["w1"], 1) * s1 + b1)
    h = silu(conv(h, params["w2"], 1) * s2 + b2)
    skip = conv(x, params["wsk"].reshape(1, 1, Cin, Cout), 0) + params["bsk"]
    out = skip + h
    return jnp.transpose(out, (0, 3, 1, 2))


if __name__ == "__main__":
    N, Cin, Cout, H, W = 2, 4, 8, 16, 16

    key = jax.random.PRNGKey(0)
    ks = jax.random.split(key, 13)
    params = {
        "w1": 0.1 * jax.random.normal(ks[0], (K, K, Cin, Cout), jnp.float32),
        "w2": 0.1 * jax.random.normal(ks[1], (K, K, Cout, Cout), jnp.float32),
        "wsk": 0.1 * jax.random.normal(ks[2], (Cin, Cout), jnp.float32),
        "bsk": 0.1 * jax.random.normal(ks[3], (Cout,), jnp.float32),
        "bn1_gamma": jax.random.uniform(ks[4], (Cout,), jnp.float32, 0.5, 1.5),
        "bn1_beta": 0.1 * jax.random.normal(ks[5], (Cout,), jnp.float32),
        "bn1_mean": 0.1 * jax.random.normal(ks[6], (Cout,), jnp.float32),
        "bn1_var": jax.random.uniform(ks[7], (Cout,), jnp.float32, 0.5, 1.5),
        "bn2_gamma": jax.random.uniform(ks[8], (Cout,), jnp.float32, 0.5, 1.5),
        "bn2_beta": 0.1 * jax.random.normal(ks[9], (Cout,), jnp.float32),
        "bn2_mean": 0.1 * jax.random.normal(ks[10], (Cout,), jnp.float32),
        "bn2_var": jax.random.uniform(ks[11], (Cout,), jnp.float32, 0.5, 1.5),
    }
    x = jax.random.normal(ks[12], (N, Cin, H, W), jnp.float32)

    out = jax.block_until_ready(residual_conv(x, params))
    ref = reference_forward(x, params)

    assert out.shape == (N, Cout, H, W)
    assert jnp.max(jnp.abs(out - ref)) < 1e-4, "mismatch vs pure-JAX reference"

    print("KERNEL_OK")
</pallas_src>

<mosaic_0001>
module attributes {stable_mosaic.version = 11 : i64} {
  func.func @_residual_conv_kernel(%arg0: i32, %arg1: memref<1x8x256xf32, #tpu.memory_space<vmem>>, %arg2: memref<2x256xf32, #tpu.memory_space<vmem>>, %arg3: memref<8x72xf32, #tpu.memory_space<vmem>>, %arg4: memref<8x1xf32, #tpu.memory_space<vmem>>, %arg5: memref<8x72xf32, #tpu.memory_space<vmem>>, %arg6: memref<8x1xf32, #tpu.memory_space<vmem>>, %arg7: memref<8x8xf32, #tpu.memory_space<vmem>>, %arg8: memref<8x1xf32, #tpu.memory_space<vmem>>, %arg9: memref<1x8x256xf32, #tpu.memory_space<vmem>>) attributes {dimension_semantics = [#tpu.dimension_semantics<parallel>], iteration_bounds = array<i64: 2>, scalar_prefetch = 0 : i64, scratch_operands = 0 : i64, tpu.core_type = #tpu.core_type<tc>, window_params = [{transform_indices = @transform_0, window_bounds = array<i64: 1, 8, 256>}, {pipeline_mode = #tpu.pipeline_mode<synchronous>, transform_indices = @transform_1, window_bounds = array<i64: 2, 256>}, {pipeline_mode = #tpu.pipeline_mode<synchronous>, transform_indices = @transform_2, window_bounds = array<i64: 8, 72>}, {pipeline_mode = #tpu.pipeline_mode<synchronous>, transform_indices = @transform_3, window_bounds = array<i64: 8, 1>}, {pipeline_mode = #tpu.pipeline_mode<synchronous>, transform_indices = @transform_4, window_bounds = array<i64: 8, 72>}, {pipeline_mode = #tpu.pipeline_mode<synchronous>, transform_indices = @transform_5, window_bounds = array<i64: 8, 1>}, {pipeline_mode = #tpu.pipeline_mode<synchronous>, transform_indices = @transform_6, window_bounds = array<i64: 8, 8>}, {pipeline_mode = #tpu.pipeline_mode<synchronous>, transform_indices = @transform_7, window_bounds = array<i64: 8, 1>}, {transform_indices = @transform_8, window_bounds = array<i64: 1, 8, 256>}]} {
    %c0 = arith.constant 0 : index
    %c0_0 = arith.constant 0 : index
    %c0_1 = arith.constant 0 : index
    %0 = vector.load %arg1[%c0, %c0_0, %c0_1] : memref<1x8x256xf32, #tpu.memory_space<vmem>>, vector<1x8x256xf32>
    %1 = vector.shape_cast %0 : vector<1x8x256xf32> to vector<8x256xf32>
    %c0_2 = arith.constant 0 : index
    %c0_3 = arith.constant 0 : index
    %2 = vector.load %arg2[%c0_2, %c0_3] : memref<2x256xf32, #tpu.memory_space<vmem>>, vector<2x256xf32>
    %3 = vector.extract_strided_slice %2 {offsets = [0, 0], sizes = [1, 256], strides = [1, 1]} : vector<2x256xf32> to vector<1x256xf32>
    %4 = vector.extract_strided_slice %2 {offsets = [1, 0], sizes = [1, 256], strides = [1, 1]} : vector<2x256xf32> to vector<1x256xf32>
    %cst = arith.constant 0.000000e+00 : f32
    %5 = vector.broadcast %cst : f32 to vector<8x17xf32>
    %6 = vector.extract_strided_slice %1 {offsets = [0, 0], sizes = [8, 239], strides = [1, 1]} : vector<8x256xf32> to vector<8x239xf32>
    %7 = tpu.concatenate %5, %6 in 1 : vector<8x17xf32>, vector<8x239xf32> -> vector<8x256xf32>
    %8 = vector.broadcast %3 : vector<1x256xf32> to vector<8x256xf32>
    %9 = arith.mulf %7, %8 : vector<8x256xf32>
    %cst_4 = arith.constant 0.000000e+00 : f32
    %10 = vector.broadcast %cst_4 : f32 to vector<8x16xf32>
    %11 = vector.extract_strided_slice %1 {offsets = [0, 0], sizes = [8, 240], strides = [1, 1]} : vector<8x256xf32> to vector<8x240xf32>
    %12 = tpu.concatenate %10, %11 in 1 : vector<8x16xf32>, vector<8x240xf32> -> vector<8x256xf32>
    %cst_5 = arith.constant 0.000000e+00 : f32
    %13 = vector.broadcast %cst_5 : f32 to vector<8x15xf32>
    %14 = vector.extract_strided_slice %1 {offsets = [0, 0], sizes = [8, 241], strides = [1, 1]} : vector<8x256xf32> to vector<8x241xf32>
    %15 = tpu.concatenate %13, %14 in 1 : vector<8x15xf32>, vector<8x241xf32> -> vector<8x256xf32>
    %16 = vector.broadcast %4 : vector<1x256xf32> to vector<8x256xf32>
    %17 = arith.mulf %15, %16 : vector<8x256xf32>
    %cst_6 = arith.constant 0.000000e+00 : f32
    %18 = vector.broadcast %cst_6 : f32 to vector<8x1xf32>
    %19 = vector.extract_strided_slice %1 {offsets = [0, 0], sizes = [8, 255], strides = [1, 1]} : vector<8x256xf32> to vector<8x255xf32>
    %20 = tpu.concatenate %18, %19 in 1 : vector<8x1xf32>, vector<8x255xf32> -> vector<8x256xf32>
    %21 = vector.broadcast %3 : vector<1x256xf32> to vector<8x256xf32>
    %22 = arith.mulf %20, %21 : vector<8x256xf32>
    %23 = vector.extract_strided_slice %1 {offsets = [0, 1], sizes = [8, 255], strides = [1, 1]} : vector<8x256xf32> to vector<8x255xf32>
    %cst_7 = arith.constant 0.000000e+00 : f32
    %24 = vector.broadcast %cst_7 : f32 to vector<8x1xf32>
    %25 = tpu.concatenate %23, %24 in 1 : vector<8x255xf32>, vector<8x1xf32> -> vector<8x256xf32>
    %26 = vector.broadcast %4 : vector<1x256xf32> to vector<8x256xf32>
    %27 = arith.mulf %25, %26 : vector<8x256xf32>
    %28 = vector.extract_strided_slice %1 {offsets = [0, 15], sizes = [8, 241], strides = [1, 1]} : vector<8x256xf32> to vector<8x241xf32>
    %cst_8 = arith.constant 0.000000e+00 : f32
    %29 = vector.broadcast %cst_8 : f32 to vector<8x15xf32>
    %30 = tpu.concatenate %28, %29 in 1 : vector<8x241xf32>, vector<8x15xf32> -> vector<8x256xf32>
    %31 = vector.broadcast %3 : vector<1x256xf32> to vector<8x256xf32>
    %32 = arith.mulf %30, %31 : vector<8x256xf32>
    %33 = vector.extract_strided_slice %1 {offsets = [0, 16], sizes = [8, 240], strides = [1, 1]} : vector<8x256xf32> to vector<8x240xf32>
    %cst_9 = arith.constant 0.000000e+00 : f32
    %34 = vector.broadcast %cst_9 : f32 to vector<8x16xf32>
    %35 = tpu.concatenate %33, %34 in 1 : vector<8x240xf32>, vector<8x16xf32> -> vector<8x256xf32>
    %36 = vector.extract_strided_slice %1 {offsets = [0, 17], sizes = [8, 239], strides = [1, 1]} : vector<8x256xf32> to vector<8x239xf32>
    %cst_10 = arith.constant 0.000000e+00 : f32
    %37 = vector.broadcast %cst_10 : f32 to vector<8x17xf32>
    %38 = tpu.concatenate %36, %37 in 1 : vector<8x239xf32>, vector<8x17xf32> -> vector<8x256xf32>
    %39 = vector.broadcast %4 : vector<1x256xf32> to vector<8x256xf32>
    %40 = arith.mulf %38, %39 : vector<8x256xf32>
    %41 = tpu.concatenate %9, %12, %17, %22, %1, %27, %32, %35, %40 in 0 : vector<8x256xf32>, vector<8x256xf32>, vector<8x256xf32>, vector<8x256xf32>, vector<8x256xf32>, vector<8x256xf32>, vector<8x256xf32>, vector<8x256xf32>, vector<8x256xf32> -> vector<72x256xf32>
    %c0_11 = arith.constant 0 : index
    %c0_12 = arith.constant 0 : index
    %42 = vector.load %arg3[%c0_11, %c0_12] : memref<8x72xf32, #tpu.memory_space<vmem>>, vector<8x72xf32>
    %cst_13 = arith.constant dense<0.000000e+00> : vector<8x256xf32>
    %43 = tpu.matmul %42, %41, %cst_13 {dimension_numbers = #tpu.dot_dimension_numbers<[1], [0], [0], [1], [0, 0, 1, 1], [], []>} : vector<8x72xf32>, vector<72x256xf32>, vector<8x256xf32> -> vector<8x256xf32>
    %c0_14 = arith.constant 0 : index
    %c0_15 = arith.constant 0 : index
    %44 = vector.load %arg4[%c0_14, %c0_15] : memref<8x1xf32, #tpu.memory_space<vmem>>, vector<8x1xf32>
    %45 = vector.broadcast %44 : vector<8x1xf32> to vector<8x256xf32>
    %46 = arith.addf %43, %45 : vector<8x256xf32>
    %47 = arith.negf %46 : vector<8x256xf32>
    %48 = math.exp %47 : vector<8x256xf32>
    %cst_16 = arith.constant 1.000000e+00 : f32
    %49 = vector.broadcast %cst_16 : f32 to vector<8x256xf32>
    %50 = arith.addf %49, %48 : vector<8x256xf32>
    %51 = arith.divf %49, %50 : vector<8x256xf32>
    %52 = arith.mulf %46, %51 : vector<8x256xf32>
    %cst_17 = arith.constant 0.000000e+00 : f32
    %53 = vector.broadcast %cst_17 : f32 to vector<8x17xf32>
    %54 = vector.extract_strided_slice %52 {offsets = [0, 0], sizes = [8, 239], strides = [1, 1]} : vector<8x256xf32> to vector<8x239xf32>
    %55 = tpu.concatenate %53, %54 in 1 : vector<8x17xf32>, vector<8x239xf32> -> vector<8x256xf32>
    %56 = vector.broadcast %3 : vector<1x256xf32> to vector<8x256xf32>
    %57 = arith.mulf %55, %56 : vector<8x256xf32>
    %cst_18 = arith.constant 0.000000e+00 : f32
    %58 = vector.broadcast %cst_18 : f32 to vector<8x16xf32>
    %59 = vector.extract_strided_slice %52 {offsets = [0, 0], sizes = [8, 240], strides = [1, 1]} : vector<8x256xf32> to vector<8x240xf32>
    %60 = tpu.concatenate %58, %59 in 1 : vector<8x16xf32>, vector<8x240xf32> -> vector<8x256xf32>
    %cst_19 = arith.constant 0.000000e+00 : f32
    %61 = vector.broadcast %cst_19 : f32 to vector<8x15xf32>
    %62 = vector.extract_strided_slice %52 {offsets = [0, 0], sizes = [8, 241], strides = [1, 1]} : vector<8x256xf32> to vector<8x241xf32>
    %63 = tpu.concatenate %61, %62 in 1 : vector<8x15xf32>, vector<8x241xf32> -> vector<8x256xf32>
    %64 = vector.broadcast %4 : vector<1x256xf32> to vector<8x256xf32>
    %65 = arith.mulf %63, %64 : vector<8x256xf32>
    %cst_20 = arith.constant 0.000000e+00 : f32
    %66 = vector.broadcast %cst_20 : f32 to vector<8x1xf32>
    %67 = vector.extract_strided_slice %52 {offsets = [0, 0], sizes = [8, 255], strides = [1, 1]} : vector<8x256xf32> to vector<8x255xf32>
    %68 = tpu.concatenate %66, %67 in 1 : vector<8x1xf32>, vector<8x255xf32> -> vector<8x256xf32>
    %69 = vector.broadcast %3 : vector<1x256xf32> to vector<8x256xf32>
    %70 = arith.mulf %68, %69 : vector<8x256xf32>
    %71 = vector.extract_strided_slice %52 {offsets = [0, 1], sizes = [8, 255], strides = [1, 1]} : vector<8x256xf32> to vector<8x255xf32>
    %cst_21 = arith.constant 0.000000e+00 : f32
    %72 = vector.broadcast %cst_21 : f32 to vector<8x1xf32>
    %73 = tpu.concatenate %71, %72 in 1 : vector<8x255xf32>, vector<8x1xf32> -> vector<8x256xf32>
    %74 = vector.broadcast %4 : vector<1x256xf32> to vector<8x256xf32>
    %75 = arith.mulf %73, %74 : vector<8x256xf32>
    %76 = vector.extract_strided_slice %52 {offsets = [0, 15], sizes = [8, 241], strides = [1, 1]} : vector<8x256xf32> to vector<8x241xf32>
    %cst_22 = arith.constant 0.000000e+00 : f32
    %77 = vector.broadcast %cst_22 : f32 to vector<8x15xf32>
    %78 = tpu.concatenate %76, %77 in 1 : vector<8x241xf32>, vector<8x15xf32> -> vector<8x256xf32>
    %79 = vector.broadcast %3 : vector<1x256xf32> to vector<8x256xf32>
    %80 = arith.mulf %78, %79 : vector<8x256xf32>
    %81 = vector.extract_strided_slice %52 {offsets = [0, 16], sizes = [8, 240], strides = [1, 1]} : vector<8x256xf32> to vector<8x240xf32>
    %cst_23 = arith.constant 0.000000e+00 : f32
    %82 = vector.broadcast %cst_23 : f32 to vector<8x16xf32>
    %83 = tpu.concatenate %81, %82 in 1 : vector<8x240xf32>, vector<8x16xf32> -> vector<8x256xf32>
    %84 = vector.extract_strided_slice %52 {offsets = [0, 17], sizes = [8, 239], strides = [1, 1]} : vector<8x256xf32> to vector<8x239xf32>
    %cst_24 = arith.constant 0.000000e+00 : f32
    %85 = vector.broadcast %cst_24 : f32 to vector<8x17xf32>
    %86 = tpu.concatenate %84, %85 in 1 : vector<8x239xf32>, vector<8x17xf32> -> vector<8x256xf32>
    %87 = vector.broadcast %4 : vector<1x256xf32> to vector<8x256xf32>
    %88 = arith.mulf %86, %87 : vector<8x256xf32>
    %89 = tpu.concatenate %57, %60, %65, %70, %52, %75, %80, %83, %88 in 0 : vector<8x256xf32>, vector<8x256xf32>, vector<8x256xf32>, vector<8x256xf32>, vector<8x256xf32>, vector<8x256xf32>, vector<8x256xf32>, vector<8x256xf32>, vector<8x256xf32> -> vector<72x256xf32>
    %c0_25 = arith.constant 0 : index
    %c0_26 = arith.constant 0 : index
    %90 = vector.load %arg5[%c0_25, %c0_26] : memref<8x72xf32, #tpu.memory_space<vmem>>, vector<8x72xf32>
    %cst_27 = arith.constant dense<0.000000e+00> : vector<8x256xf32>
    %91 = tpu.matmul %90, %89, %cst_27 {dimension_numbers = #tpu.dot_dimension_numbers<[1], [0], [0], [1], [0, 0, 1, 1], [], []>} : vector<8x72xf32>, vector<72x256xf32>, vector<8x256xf32> -> vector<8x256xf32>
    %c0_28 = arith.constant 0 : index
    %c0_29 = arith.constant 0 : index
    %92 = vector.load %arg6[%c0_28, %c0_29] : memref<8x1xf32, #tpu.memory_space<vmem>>, vector<8x1xf32>
    %93 = vector.broadcast %92 : vector<8x1xf32> to vector<8x256xf32>
    %94 = arith.addf %91, %93 : vector<8x256xf32>
    %95 = arith.negf %94 : vector<8x256xf32>
    %96 = math.exp %95 : vector<8x256xf32>
    %cst_30 = arith.constant 1.000000e+00 : f32
    %97 = vector.broadcast %cst_30 : f32 to vector<8x256xf32>
    %98 = arith.addf %97, %96 : vector<8x256xf32>
    %99 = arith.divf %97, %98 : vector<8x256xf32>
    %100 = arith.mulf %94, %99 : vector<8x256xf32>
    %c0_31 = arith.constant 0 : index
    %c0_32 = arith.constant 0 : index
    %101 = vector.load %arg7[%c0_31, %c0_32] : memref<8x8xf32, #tpu.memory_space<vmem>>, vector<8x8xf32>
    %cst_33 = arith.constant dense<0.000000e+00> : vector<8x256xf32>
    %102 = tpu.matmul %101, %1, %cst_33 {dimension_numbers = #tpu.dot_dimension_numbers<[1], [0], [0], [1], [0, 0, 1, 1], [], []>} : vector<8x8xf32>, vector<8x256xf32>, vector<8x256xf32> -> vector<8x256xf32>
    %c0_34 = arith.constant 0 : index
    %c0_35 = arith.constant 0 : index
    %103 = vector.load %arg8[%c0_34, %c0_35] : memref<8x1xf32, #tpu.memory_space<vmem>>, vector<8x1xf32>
    %104 = vector.broadcast %103 : vector<8x1xf32> to vector<8x256xf32>
    %105 = arith.addf %102, %104 : vector<8x256xf32>
    %106 = arith.addf %105, %100 : vector<8x256xf32>
    %c0_36 = arith.constant 0 : index
    %c0_37 = arith.constant 0 : index
    %c0_38 = arith.constant 0 : index
    %107 = vector.load %arg9[%c0_36, %c0_37, %c0_38] : memref<1x8x256xf32, #tpu.memory_space<vmem>>, vector<1x8x256xf32>
    %108 = vector.shape_cast %107 : vector<1x8x256xf32> to vector<8x256xf32>
    %109 = vector.shape_cast %106 : vector<8x256xf32> to vector<1x8x256xf32>
    tpu.vector_store %arg9[%c0_36, %c0_37, %c0_38], %109 {strides = array<i32>} : memref<1x8x256xf32, #tpu.memory_space<vmem>>, vector<1x8x256xf32>,
    return
  }
  func.func @transform_0(%arg0: i32) -> (i32, i32, i32) {
    %c0_i32 = arith.constant 0 : i32
    %c0_i32_0 = arith.constant 0 : i32
    %c0_i32_1 = arith.constant 0 : i32
    return %arg0, %c0_i32, %c0_i32_0 : i32, i32, i32
  }
  func.func @transform_1(%arg0: i32) -> (i32, i32) {
    %c0_i32 = arith.constant 0 : i32
    %c0_i32_0 = arith.constant 0 : i32
    %c0_i32_1 = arith.constant 0 : i32
    return %c0_i32, %c0_i32_0 : i32, i32
  }
  func.func @transform_2(%arg0: i32) -> (i32, i32) {
    %c0_i32 = arith.constant 0 : i32
    %c0_i32_0 = arith.constant 0 : i32
    %c0_i32_1 = arith.constant 0 : i32
    return %c0_i32, %c0_i32_0 : i32, i32
  }
  func.func @transform_3(%arg0: i32) -> (i32, i32) {
    %c0_i32 = arith.constant 0 : i32
    %c0_i32_0 = arith.constant 0 : i32
    %c0_i32_1 = arith.constant 0 : i32
    return %c0_i32, %c0_i32_0 : i32, i32
  }
  func.func @transform_4(%arg0: i32) -> (i32, i32) {
    %c0_i32 = arith.constant 0 : i32
    %c0_i32_0 = arith.constant 0 : i32
    %c0_i32_1 = arith.constant 0 : i32
    return %c0_i32, %c0_i32_0 : i32, i32
  }
  func.func @transform_5(%arg0: i32) -> (i32, i32) {
    %c0_i32 = arith.constant 0 : i32
    %c0_i32_0 = arith.constant 0 : i32
    %c0_i32_1 = arith.constant 0 : i32
    return %c0_i32, %c0_i32_0 : i32, i32
  }
  func.func @transform_6(%arg0: i32) -> (i32, i32) {
    %c0_i32 = arith.constant 0 : i32
    %c0_i32_0 = arith.constant 0 : i32
    %c0_i32_1 = arith.constant 0 : i32
    return %c0_i32, %c0_i32_0 : i32, i32
  }
  func.func @transform_7(%arg0: i32) -> (i32, i32) {
    %c0_i32 = arith.constant 0 : i32
    %c0_i32_0 = arith.constant 0 : i32
    %c0_i32_1 = arith.constant 0 : i32
    return %c0_i32, %c0_i32_0 : i32, i32
  }
  func.func @transform_8(%arg0: i32) -> (i32, i32, i32) {
    %c0_i32 = arith.constant 0 : i32
    %c0_i32_0 = arith.constant 0 : i32
    %c0_i32_1 = arith.constant 0 : i32
    return %arg0, %c0_i32, %c0_i32_0 : i32, i32, i32
  }
}

</mosaic_0001>

<bundles_post_ra>
// kernel: tpu_custom_call.1
= control target key start
LH: loop header
LB: loop body
LE: loop exit
PB: predicated region body
PF: predicated region fallthrough
CT: control target
= control target key end

     0   :  { %13 = vsyncpa [#allocation3], 0  ;;  %s1451_s0 = inlined_call_operand.hbm [shape: f32[2,8,256], index: 0, kind: input, shape index: {}]   ;;  %s1452_s1 = inlined_call_operand.vmem [shape: f32[2,256], index: 1, kind: input, shape index: {}]   ;;  %s1453_s2 = inlined_call_operand.vmem [shape: f32[8,72], index: 2, kind: input, shape index: {}]   ;;  %s1454_s3 = inlined_call_operand.vmem [shape: f32[8,1], index: 3, kind: input, shape index: {}]   ;;  %s1455_s4 = inlined_call_operand.vmem [shape: f32[8,72], index: 4, kind: input, shape index: {}]   ;;  %s1456_s5 = inlined_call_operand.vmem [shape: f32[8,1], index: 5, kind: input, shape index: {}]   ;;  %s1457_s6 = inlined_call_operand.vmem [shape: f32[8,8], index: 6, kind: input, shape index: {}]   ;;  %s1458_s7 = inlined_call_operand.vmem [shape: f32[8,1], index: 7, kind: input, shape index: {}]   ;;  %s1459_s8 = inlined_call_operand.hbm [shape: f32[2,8,256], index: 8, kind: output, shape index: {}]  }
   0x1   :  { %15 = vsyncpa [#allocation3 + $0x1], 0 }
   0x2   :  { %16 = vsyncpa [#allocation4], 0 }
   0x3   :  { %18 = vsyncpa [#allocation4 + $0x1], 0  ;;  %s1142_s27 = smov 0   ;;  %s1144_s28 = smov 0  }
   0x4   :  { %s1146_s29 = smov 0   ;;  %s1148_s30 = smov 0  }
   0x5 LB: > { %s1163_s9 = sadd.s32 4294967295, %s1083_s30   ;;  %s888_s10 = sadd.s32 4294967294, %s1083_s30   ;;  %s1083_s30 = sphi %s1148_s30, %s1480_s30   ;;  %s1079_s29 = sphi %s1146_s29, %s1479_s29   ;;  %s1075_s28 = sphi %s1144_s28, %s1478_s28   ;;  %s1071_s27 = sphi %s1142_s27, %s1477_s27  }
   0x6   : > { %s1167_s11 = sadd.s32 1, %s1083_s30   ;;  %s31_s12 = sadd.s32 1, %s1079_s29 }
   0x7   : > { %s28_s13 = ssub.s32 %s1083_s30, %s1167_s11  ;;  %p38_p0 = scmp.ne.s32.totalorder %s1079_s29, %s1075_s28 }
   0x8   : > { %p29_p1 = scmp.eq.s32.totalorder %s28_s13, 0  ;;  %p39_p2 = scmp.eq.s32.totalorder %s1083_s30, 0 }
   0x9   : > { %p44_p3 = scmp.ne.s32.totalorder %s1075_s28, %s1071_s27  ;;  %p45_p4 = scmp.eq.s32.totalorder %s1163_s9, 0 }
   0xa   : > { %s1179_s14 = scalar_select %p29_p1, %s1079_s29, %s31_s12  }
   0xb   : > { %p1181_p5 = por %p39_p2, %p38_p0  ;;  %p1185_p6 = por %p45_p4, %p44_p3 }
   0xc   : > { %1462 = sst [smem:[#allocation8_spill]] %s1179_s14  ;;  %p215_p7 = scmp.eq.s32.totalorder %s1163_s9, 1 }
   0xd   : > { %s1464_s16 = scalar_select %p1185_p6, 1, 0 }
   0xe   : > { %p221_p8 = scmp.eq.s32.totalorder %s888_s10, 1  ;;  %p929_p10 = scmp.lt.s32.totalorder %s1083_s30, 2 }
   0xf   : > { %p1192_p11 = por %p215_p7, %p38_p0  ;;  %s262_s19 = sand.u32 1, %s1079_s29  }
  0x10   : > { %p1196_p12 = por %p221_p8, %p44_p3  ;;  %s915_s20 = sshll.u32 %s1083_s30, 8 }
  0x11   : > { %s1465_s17 = scalar_select %p1192_p11, 1, 0 }
  0x12   : > { %s1466_s18 = scalar_select %p1196_p12, 1, 0 }
  0x13   : > { %s891_s21 = sshll.u32 %s262_s19, 4  ;;  %s1205_s24 = scalar_lea.hbm %s1451_s0, %s915_s20 }
  0x14   : > { %s266_s25 = scalar_lea.vmem [#allocation2], %s891_s21  ;;  %p1209_p13 = pnand %p929_p10, %p1181_p5 }
  0x15   : > { %s274_s26 = sshll.u32 %s266_s25, 4  ;;  %s263_s12 = scalar_lea.sflag [#allocation3], %s262_s19  ;;  %s1213_s26 = int_to_ptr.vmem [resolvable:$true] %s274_s26 }
  0x16   : > { %s991_s13 = scalar_lea.hbm %s1205_s24, 256  ;;  %p993_p3 = pneg %p1209_p13 }
  0x17   : > { %p992_p2 = scmp.ne.s32.totalorder %s1205_s24, %s991_s13  ;;  %s996_s15 = scalar_lea.hbm %s1451_s0, 512 }
  0x18   : > { %p997_p5 = scmp.lt.s32.totalorder %s1205_s24, %s1451_s0  ;;  %p998_p8 = scmp.lt.s32.totalorder %s996_s15, %s991_s13 }
  0x19   : > { %p994_p4 = pnand %p993_p3, %p992_p2 }
  0x1a   : > { %p999_p10 = por %p998_p8, %p997_p5 }
  0x1b   : > { %p995_p7 = pneg %p994_p4 }
  0x1d   : > { %p1000_p9 = pnand %p999_p10, %p995_p7 }
  0x1f   : > { %1003 = shalt.err (!%p1000_p9)
}
  0x20   : > { %s1004_s19 = scalar_lea.vmem %s1213_s26, 256  ;;  %s1085_s25 = smov [#allocation2]  }
  0x21   : > { %p1005_p0 = scmp.ne.s32.totalorder %s1213_s26, %s1004_s19  ;;  %s1009_s14 = sshll.u32 %s1085_s25, 4  ;;  %s1010_s14 = int_to_ptr.vmem [resolvable:$false] %s1009_s14 }
  0x22   : > { %s1011_s20 = scalar_lea.vmem %s1010_s14, 512  ;;  %p1012_p4 = scmp.lt.s32.totalorder %s1213_s26, %s1010_s14 }
  0x23   : > { %p1007_p1 = pnand %p1005_p0, %p993_p3  ;;  %p1013_p12 = scmp.lt.s32.totalorder %s1011_s20, %s1004_s19 }
  0x25   : > { %p1008_p2 = pneg %p1007_p1  ;;  %p1014_p11 = por %p1013_p12, %p1012_p4 }
  0x27   : > { %p1015_p6 = pnand %p1014_p11, %p1008_p2 }
  0x29   : > { %1018 = shalt.err (!%p1015_p6)
}
  0x2a   : > { %924 = dma.hbm_to_vmem [thread:$0]  (!%p1209_p13), %s1205_s24, 256, %s1213_s26, %s263_s12  }
  0x2b   : > { %p1468_p9 = scmp.lt.s32.totalorder %s1083_s30, 3  ;;  %p1469_p7 = scmp.ge.s32.totalorder %s1083_s30, 1 }
  0x2d   : > { %p280_p0 = pnand %p1469_p7, %p1468_p9 }
  0x2e   : > { %s1240_s13 = sand.u32 (!%p280_p0), 1, %s1075_s28   ;;  %p1470_p6 = scmp.ne.s32.totalorder (!%p280_p0), %s1464_s16, 0 }
  0x2f   : > { %283 = sbr.rel (%p280_p0) target bundleno = 829 (0x33d), region = 52  ;;  %s895_s14 = sshll.u32 (!%p280_p0), %s1240_s13, 4 }
  0x30   : > { %s286_s21 = scalar_lea.sflag (!%p280_p0), [#allocation3], %s1240_s13  ;;  %s289_s10 = scalar_lea.vmem (!%p280_p0), [#allocation2], %s895_s14 }
  0x34   : > { %1062 = dma.done.wait (%p1470_p6), %s286_s21, 256  }
  0x35   : > { %1064 = vsyncadd (%p1470_p6), %s286_s21, 4294967040  ;;  %v1250_v0 = vld [vmem:[%s289_s10 + $0x8] sm:$0xff]  ;;  %s1086_s24 = smov 113   ;;  %s1087_s26 = smov 111   ;;  %v1256_v1 = vld [vmem:[%s289_s10] sm:$0xff]  ;;  %v1091_v2 = vmov 0.0   ;;  %v337_v5 = vlaneseq }
  0x36   : > { %419 = vrot.lane.b32.xlu1 %v1250_v0, %s1086_s24  ;;  %439 = vrot.lane.b32.xlu0 %v1250_v0, %s1087_s26  ;;  %s1088_s16 = smov 112   ;;  %s1089_s12 = smov 127   ;;  %v1093_v3 = vmov 0   ;;  %v449_v4 = vld [vmem:[%s1454_s3] sm:$0xff]  ;;  %vm441_vm0 = vcmask 908288   ;;  %vm421_vm1 = vcmask 924672  }
  0x37   : > { %s1090_s15 = smov 1   ;;  %523 = vmatprep.mubr.f32.mxu0 %v1091_v2  ;;  %696 = vmatprep.mubr.f32.mxu1 %v1091_v2  ;;  %s1092_s22 = smov 15   ;;  %v338_v6 = vshrl.u32 %v337_v5, 7  ;;  %v324_v8 = vld [vmem:[%s1452_s1] sm:$0xf]  ;;  %vm432_vm2 = vcmask 916480  }
  0x38   : > { %973 = vset.pattern.permute.xlu0 %v1093_v3  ;;  %974 = vset.pattern.permute.xlu1 %v1093_v3  ;;  %s1094_s23 = smov 17   ;;  %s1095_s19 = smov 16   ;;  %vm410_vm3 = vcmask 1039360   ;;  %vm399_vm4 = vcmask 7168   ;;  %vm370_vm5 = vcmask 121856   ;;  %vm331_vm6 = vcmask 138240  }
  0x39   : > { %v381_v7 = vsub.s32 3, %v338_v6  ;;  %v377_v9 = vsub.s32 1, %v338_v6  ;;  %v343_v11 = vsub.s32 2, %v338_v6  ;;  %v339_v14 = vsub.s32 0, %v338_v6  ;;  %v448_v63 = vld [vmem:[%s1453_s2] sm:$0xff]  ;;  %s321_s10 = scalar_lea.vmem [#allocation5], %s895_s14 }
  0x3a   : > { %417 = vrot.lane.b32.xlu1 %v1256_v1, %s1086_s24  ;;  %437 = vrot.lane.b32.xlu0 %v1256_v1, %s1087_s26  ;;  %vm361_vm7 = vcmask 130048   ;;  %vm455_vm9 = vcmask 588800   ;;  %vm724_vm10 = vcmask 64512   ;;  %s818_s25 = sshll.u32 %s321_s10, 4  ;;  %p1473_p12 = scmp.ne.s32.totalorder %s1465_s17, 0  ;;  %s819_s25 = int_to_ptr.vmem [resolvable:$true] %s818_s25 }
  0x3b   : > { %v382_v10 = vrot.slane %v324_v8, %v381_v7  ;;  %v378_v13 = vrot.slane %v324_v8, %v377_v9  ;;  %v344_v17 = vrot.slane %v324_v8, %v343_v11  ;;  %v340_v20 = vrot.slane %v324_v8, %v339_v14  ;;  %vm1329_vm8 = vmneg %vm361_vm7 }
  0x3d   : > { %v1294_v12 = vrot.slane %v382_v10, %v377_v9  ;;  %v1298_v21 = vrot.slane %v378_v13, %v377_v9  ;;  %v1300_v24 = vrot.slane %v344_v17, %v339_v14  ;;  %v1304_v27 = vrot.slane %v340_v20, %v339_v14  ;;  %v623_v17 = vld [vmem:[%s1456_s5] sm:$0xff] }
  0x3e   : > { %430 = vrot.lane.b32.xlu1 %v1250_v0, %s1088_s16  ;;  %428 = vrot.lane.b32.xlu0 %v1256_v1, %s1088_s16 }
  0x42   : > { %406 = vrot.lane.b32.xlu1 %v1256_v1, %s1089_s12  ;;  %408 = vrot.lane.b32.xlu0 %v1250_v0, %s1089_s12 }
  0x46   : > { %397 = vrot.lane.b32.xlu1 %v1250_v0, %s1090_s15  ;;  %395 = vrot.lane.b32.xlu0 %v1256_v1, %s1090_s15 }
  0x4a   : > { %368 = vrot.lane.b32.xlu1 %v1250_v0, %s1092_s22  ;;  %366 = vrot.lane.b32.xlu0 %v1256_v1, %s1092_s22 }
  0x4e   : > { %329 = vrot.lane.b32.xlu1 %v1250_v0, %s1094_s23  ;;  %327 = vrot.lane.b32.xlu0 %v1256_v1, %s1094_s23 }
  0x52   : > { %359 = vrot.lane.b32.xlu1 %v1250_v0, %s1095_s19  ;;  %357 = vrot.lane.b32.xlu0 %v1256_v1, %s1095_s19 }
  0x56   : > { %452 = vperm.xlu0 %973, %v449_v4  }
  0xa8   : > { %v420_v15 = vpop.permute.xlu1 %419  ;;  %v440_v16 = vpop.permute.xlu0 %439 }
  0xa9   : > { %v445_v18 = vsel %vm441_vm0, %v440_v16, 0.0  ;;  %v425_v26 = vsel %vm421_vm1, %v420_v15, 0.0 }
  0xaa   : > { %v447_v19 = vmul.f32 %v445_v18, %v1294_v12  ;;  %v427_v32 = vmul.f32 %v425_v26, %v1300_v24  ;;  %v718_v18 = vld [vmem:[%s1458_s7] sm:$0xff] }
  0xac   : > { %473 = vmatprep.subr.mxu0 %v447_v19  ;;  %v418_v22 = vpop.permute.xlu1 %417  ;;  %v438_v23 = vpop.permute.xlu0 %437 }
  0xad   : > { %v442_v25 = vsel %vm441_vm0, %v438_v23, %v440_v16  ;;  %v422_v29 = vsel %vm421_vm1, %v418_v22, %v420_v15  ;;  %v717_v16 = vld [vmem:[%s1457_s6] sm:$0xff] }
  0xae   : > { %v446_v28 = vmul.f32 %v442_v25, %v1298_v21  ;;  %v426_v34 = vmul.f32 %v422_v29, %v1304_v27 }
  0xb0   : > { %v431_v30 = vpop.permute.xlu1 %430  ;;  %474 = vmatpush1.msra.mxu0 %v446_v28  ;;  %v429_v31 = vpop.permute.xlu0 %428 }
  0xb1   : > { %897 = vmatprep.subr.msk.mxu0 %vm432_vm2, %v431_v30  ;;  %v433_v33 = vsel %vm432_vm2, %v429_v31, %v431_v30 }
  0xb2   : > { %476 = vmatpush1.msra.mxu0 %v433_v33 }
  0xb3   : > { %477 = vmatprep.subr.mxu0 %v427_v32 }
  0xb4   : > { %v407_v35 = vpop.permute.xlu1 %406  ;;  %478 = vmatpush1.msra.mxu0 %v426_v34  ;;  %v409_v36 = vpop.permute.xlu0 %408 }
  0xb5   : > { %v411_v37 = vsel %vm410_vm3, %v407_v35, %v409_v36  ;;  %v414_v38 = vsel %vm410_vm3, %v409_v36, 0.0 }
  0xb6   : > { %v415_v39 = vmul.f32 %v411_v37, %v1298_v21  ;;  %v416_v40 = vmul.f32 %v414_v38, %v1294_v12 }
  0xb8   : > { %v398_v41 = vpop.permute.xlu1 %397  ;;  %479 = vmatprep.subr.mxu0 %v416_v40  ;;  %v396_v42 = vpop.permute.xlu0 %395 }
  0xb9   : > { %v400_v43 = vsel %vm399_vm4, %v396_v42, %v398_v41  ;;  %v403_v44 = vsel %vm399_vm4, 0.0, %v396_v42  ;;  %480 = vmatpush1.msra.mxu0 %v415_v39 }
  0xba   : > { %v404_v45 = vmul.f32 %v403_v44, %v1304_v27  ;;  %v405_v46 = vmul.f32 %v400_v43, %v1300_v24  ;;  %481 = vmatprep.subr.mxu0 %v1250_v0 }
  0xbb   : > { %482 = vmatpush1.msra.mxu0 %v1256_v1 }
  0xbc   : > { %v369_v47 = vpop.permute.xlu1 %368  ;;  %483 = vmatprep.subr.mxu0 %v405_v46  ;;  %v367_v48 = vpop.permute.xlu0 %366 }
  0xbd   : > { %v371_v49 = vsel %vm370_vm5, %v367_v48, %v369_v47  ;;  %v374_v50 = vsel %vm370_vm5, 0.0, %v367_v48  ;;  %484 = vmatpush1.msra.mxu0 %v404_v45 }
  0xbe   : > { %v393_v51 = vmul.f32 %v1298_v21, %v374_v50  ;;  %v394_v52 = vmul.f32 %v1294_v12, %v371_v49 }
  0xc0   : > { %v330_v53 = vpop.permute.xlu1 %329  ;;  %485 = vmatprep.subr.mxu0 %v394_v52  ;;  %v328_v54 = vpop.permute.xlu0 %327 }
  0xc1   : > { %486 = vmatpush1.msra.mxu0 %v393_v51  ;;  %v332_v55 = vsel %vm331_vm6, %v328_v54, %v330_v53  ;;  %v335_v56 = vsel %vm331_vm6, 0.0, %v328_v54 }
  0xc2   : > { %v356_v61 = vmul.f32 %v1300_v24, %v332_v55  ;;  %v355_v62 = vmul.f32 %v1304_v27, %v335_v56 }
  0xc4   : > { %v360_v57 = vpop.permute.xlu1 %359  ;;  %v358_v58 = vpop.permute.xlu0 %357 }
  0xc5   : > { %v362_v60 = vsel %vm361_vm7, %v358_v58, %v360_v57 }
  0xc6   : > { %487 = vmatprep.subr.mxu0 %v362_v60 }
  0xc7   : > { %899 = vmatpush1.msk.msra.mxu0 %vm1329_vm8, %v358_v58 }
  0xc8   : > { %489 = vmatprep.subr.mxu0 %v356_v61 }
  0xc9   : > { %490 = vmatpush1.msra.mxu0 %v355_v62 }
  0xca   : > { %900 = vmatmul.mubr.msk.f32.vlgmr.msra.gmra.mxu0 %vm455_vm9, %v448_v63  ;;  %758 = vmatprep.subr.mxu0 %v1250_v0 }
  0xcb   : > { %759 = vmatpush1.msra.mxu0 %v1256_v1  ;;  %792 = vmatprep.mubr.f32.mxu0 %v1091_v2 }
  0xce   : > { %909 = vmatmul.mubr.msk.f32.vlgmr.msra.gmra.mxu0 %vm724_vm10, %v717_v16 }
  0xd1   : > { %v453_v3 = vpop.permute.xlu0 %452 }
 0x18a   : > { %v525_v4 = vpop.f32.mrf.mxu0 }
 0x18b   : > { %v526_v5 = vadd.f32 %v525_v4, %v453_v3 }
 0x18c   : > { %v527_v6 = vpop.f32.mrf.mxu0 }
 0x18d   : > { %v901_v7 = vmul.f32 -1.442695, %v526_v5  ;;  %v528_v8 = vadd.f32 %v527_v6, %v453_v3 }
 0x18f   : > { %975 = vpow2.f32 %v901_v7  ;;  %v902_v9 = vmul.f32 -1.442695, %v528_v8 }
 0x191   : > { %977 = vpow2.f32 %v902_v9 }
 0x19c   : > { %v976_v10 = vpop.eup %975 }
 0x19d   : > { %v536_v11 = vadd.f32 1.0, %v976_v10 }
 0x19e   : > { %v978_v13 = vpop.eup %977 }
 0x19f   : > { %979 = vrcp.f32 %v536_v11  ;;  %v537_v14 = vadd.f32 1.0, %v978_v13  ;;  %v794_v11 = vpop.f32.mrf.mxu0 }
 0x1a1   : > { %981 = vrcp.f32 %v537_v14 }
 0x1ac   : > { %v980_v0 = vpop.eup %979 }
 0x1ad   : > { %v1345_v15 = vmul.f32 %v980_v0, %v526_v5 }
 0x1ae   : > { %v982_v1 = vpop.eup %981 }
 0x1af   : > { %604 = vrot.lane.b32.xlu0 %v1345_v15, %s1088_s16  ;;  %612 = vrot.lane.b32.xlu1 %v1345_v15, %s1087_s26  ;;  %v543_v2 = vmul.f32 %v982_v1, %v528_v8 }
 0x1b3   : > { %574 = vrot.lane.b32.xlu0 %v1345_v15, %s1090_s15  ;;  %594 = vrot.lane.b32.xlu1 %v1345_v15, %s1086_s24 }
 0x1b7   : > { %596 = vrot.lane.b32.xlu0 %v543_v2, %s1086_s24  ;;  %584 = vrot.lane.b32.xlu1 %v1345_v15, %s1089_s12 }
 0x1bb   : > { %586 = vrot.lane.b32.xlu0 %v543_v2, %s1089_s12  ;;  %614 = vrot.lane.b32.xlu1 %v543_v2, %s1087_s26  ;;  %s804_s26 = scalar_lea.sflag [#allocation4], %s1240_s13  ;;  %s1019_s12 = scalar_lea.vmem %s819_s25, 256 }
 0x1bc   : > { %p1020_p11 = scmp.ne.s32.totalorder %s819_s25, %s1019_s12 }
 0x1be   : > { %p1021_p13 = pnand %p1020_p11, %p1473_p12 }
 0x1bf   : > { %564 = vrot.lane.b32.xlu0 %v1345_v15, %s1092_s22  ;;  %606 = vrot.lane.b32.xlu1 %v543_v2, %s1088_s16 }
 0x1c0   : > { %p1022_p1 = pneg %p1021_p13 }
 0x1c3   : > { %546 = vrot.lane.b32.xlu0 %v1345_v15, %s1094_s23  ;;  %576 = vrot.lane.b32.xlu1 %v543_v2, %s1090_s15 }
 0x1c7   : > { %556 = vrot.lane.b32.xlu0 %v1345_v15, %s1095_s19  ;;  %566 = vrot.lane.b32.xlu1 %v543_v2, %s1092_s22 }
 0x1cb   : > { %626 = vperm.xlu0 %973, %v623_v17   ;;  %548 = vrot.lane.b32.xlu1 %v543_v2, %s1094_s23 }
 0x1cf   : > { %558 = vrot.lane.b32.xlu1 %v543_v2, %s1095_s19  ;;  %s916_s19 = sshll.u32 %s1163_s9, 8  ;;  %s1096_s9 = smov [#allocation5]  }
 0x1d0   : > { %s816_s21 = scalar_lea.hbm %s1459_s8, %s916_s19  ;;  %s1023_s14 = sshll.u32 %s1096_s9, 4  ;;  %s1024_s14 = int_to_ptr.vmem [resolvable:$false] %s1023_s14 }
 0x1d1   : > { %s1025_s16 = scalar_lea.vmem %s1024_s14, 512  ;;  %p1026_p3 = scmp.lt.s32.totalorder %s819_s25, %s1024_s14 }
 0x1d2   : > { %p1027_p5 = scmp.lt.s32.totalorder %s1025_s16, %s1019_s12 }
 0x1d3   : > { %721 = vperm.xlu1 %974, %v718_v18  }
 0x1d4   : > { %p1028_p8 = por %p1027_p5, %p1026_p3 }
 0x1d6   : > { %p1029_p10 = pnand %p1028_p8, %p1022_p1 }
 0x221   : > { %v605_v19 = vpop.permute.xlu0 %604  ;;  %v613_v20 = vpop.permute.xlu1 %612 }
 0x225   : > { %v575_v22 = vpop.permute.xlu0 %574  ;;  %v595_v23 = vpop.permute.xlu1 %594 }
 0x226   : > { %v581_v47 = vsel %vm399_vm4, 0.0, %v575_v22 }
 0x227   : > { %v582_v51 = vmul.f32 %v581_v47, %v1304_v27 }
 0x229   : > { %v597_v25 = vpop.permute.xlu0 %596  ;;  %v585_v26 = vpop.permute.xlu1 %584 }
 0x22a   : > { %v601_v34 = vsel %vm421_vm1, %v597_v25, 0.0  ;;  %v598_v35 = vsel %vm421_vm1, %v595_v23, %v597_v25 }
 0x22b   : > { %v603_v39 = vmul.f32 %v601_v34, %v1300_v24  ;;  %v602_v41 = vmul.f32 %v598_v35, %v1304_v27 }
 0x22d   : > { %v615_v28 = vpop.permute.xlu1 %614  ;;  %v587_v31 = vpop.permute.xlu0 %586 }
 0x22e   : > { %v616_v29 = vsel %vm441_vm0, %v613_v20, %v615_v28  ;;  %v619_v30 = vsel %vm441_vm0, %v615_v28, 0.0  ;;  %v591_v37 = vsel %vm410_vm3, %v587_v31, 0.0  ;;  %v588_v40 = vsel %vm410_vm3, %v585_v26, %v587_v31 }
 0x22f   : > { %v621_v32 = vmul.f32 %v619_v30, %v1294_v12  ;;  %v620_v33 = vmul.f32 %v616_v29, %v1298_v21  ;;  %v593_v42 = vmul.f32 %v591_v37, %v1294_v12  ;;  %v592_v45 = vmul.f32 %v588_v40, %v1298_v21 }
 0x231   : > { %646 = vmatprep.subr.mxu1 %v621_v32  ;;  %v607_v36 = vpop.permute.xlu1 %606  ;;  %v565_v43 = vpop.permute.xlu0 %564 }
 0x232   : > { %647 = vmatpush1.msra.mxu1 %v620_v33  ;;  %v608_v38 = vsel %vm432_vm2, %v605_v19, %v607_v36  ;;  %v571_v48 = vsel %vm370_vm5, 0.0, %v565_v43 }
 0x233   : > { %903 = vmatprep.subr.msk.mxu1 %vm432_vm2, %v607_v36  ;;  %v572_v55 = vmul.f32 %v571_v48, %v1298_v21  ;;  %v622_v21 = vld [vmem:[%s1455_s4] sm:$0xff] }
 0x234   : > { %649 = vmatpush1.msra.mxu1 %v608_v38 }
 0x235   : > { %650 = vmatprep.subr.mxu1 %v603_v39  ;;  %v577_v44 = vpop.permute.xlu1 %576  ;;  %v547_v53 = vpop.permute.xlu0 %546 }
 0x236   : > { %v578_v46 = vsel %vm399_vm4, %v575_v22, %v577_v44  ;;  %651 = vmatpush1.msra.mxu1 %v602_v41  ;;  %v553_v58 = vsel %vm331_vm6, 0.0, %v547_v53 }
 0x237   : > { %652 = vmatprep.subr.mxu1 %v593_v42  ;;  %v583_v49 = vmul.f32 %v578_v46, %v1300_v24 }
 0x238   : > { %653 = vmatpush1.msra.mxu1 %v592_v45 }
 0x239   : > { %654 = vmatprep.subr.mxu1 %v543_v2  ;;  %v567_v50 = vpop.permute.xlu1 %566  ;;  %v557_v60 = vpop.permute.xlu0 %556 }
 0x23a   : > { %v568_v52 = vsel %vm370_vm5, %v565_v43, %v567_v50  ;;  %655 = vmatpush1.msra.mxu1 %v1345_v15  ;;  %v796_v15 = vpop.f32.mrf.mxu0 }
 0x23b   : > { %v573_v54 = vmul.f32 %v568_v52, %v1294_v12  ;;  %656 = vmatprep.subr.mxu1 %v583_v49  ;;  %v554_v12 = vmul.f32 %v553_v58, %v1304_v27 }
 0x23c   : > { %657 = vmatpush1.msra.mxu1 %v582_v51 }
 0x23d   : > { %658 = vmatprep.subr.mxu1 %v573_v54  ;;  %v549_v56 = vpop.permute.xlu1 %548 }
 0x23e   : > { %659 = vmatpush1.msra.mxu1 %v572_v55  ;;  %v550_v57 = vsel %vm331_vm6, %v547_v53, %v549_v56 }
 0x23f   : > { %v555_v63 = vmul.f32 %v550_v57, %v1300_v24 }
 0x241   : > { %v559_v61 = vpop.permute.xlu1 %558 }
 0x242   : > { %v560_v62 = vsel %vm361_vm7, %v557_v60, %v559_v61 }
 0x243   : > { %660 = vmatprep.subr.mxu1 %v560_v62 }
 0x244   : > { %905 = vmatpush1.msk.msra.mxu1 %vm1329_vm8, %v557_v60 }
 0x245   : > { %662 = vmatprep.subr.mxu1 %v555_v63 }
 0x246   : > { %663 = vmatpush1.msra.mxu1 %v554_v12  ;;  %v627_v3 = vpop.permute.xlu0 %626 }
 0x247   : > { %906 = vmatmul.mubr.msk.f32.vlgmr.msra.gmra.mxu1 %vm455_vm9, %v622_v21 }
 0x24e   : > { %v722_v13 = vpop.permute.xlu1 %721 }
 0x24f   : > { %v795_v14 = vadd.f32 %v794_v11, %v722_v13  ;;  %v797_v17 = vadd.f32 %v796_v15, %v722_v13 }
 0x307   : > { %v698_v4 = vpop.f32.mrf.mxu1 }
 0x308   : > { %v699_v5 = vadd.f32 %v698_v4, %v627_v3 }
 0x309   : > { %v700_v6 = vpop.f32.mrf.mxu1 }
 0x30a   : > { %v907_v7 = vmul.f32 -1.442695, %v699_v5  ;;  %v701_v24 = vadd.f32 %v700_v6, %v627_v3 }
 0x30c   : > { %983 = vpow2.f32 %v907_v7  ;;  %v908_v27 = vmul.f32 -1.442695, %v701_v24 }
 0x30e   : > { %985 = vpow2.f32 %v908_v27 }
 0x319   : > { %v984_v59 = vpop.eup %983 }
 0x31a   : > { %v709_v8 = vadd.f32 1.0, %v984_v59 }
 0x31b   : > { %v986_v9 = vpop.eup %985 }
 0x31c   : > { %987 = vrcp.f32 %v709_v8  ;;  %v710_v10 = vadd.f32 1.0, %v986_v9 }
 0x31e   : > { %989 = vrcp.f32 %v710_v10 }
 0x329   : > { %v988_v0 = vpop.eup %987 }
 0x32a   : > { %v715_v1 = vmul.f32 %v988_v0, %v699_v5 }
 0x32b   : > { %v990_v2 = vpop.eup %989 }
 0x32c   : > { %v716_v16 = vmul.f32 %v990_v2, %v701_v24  ;;  %v799_v18 = vadd.f32 %v795_v14, %v715_v1 }
 0x32e   : > { %v800_v19 = vadd.f32 %v797_v17, %v716_v16  ;;  %801 = vst [vmem:[%s321_s10] sm:$0xff] %v799_v18 }
 0x330   : > { %802 = vst [vmem:[%s321_s10 + $0x8] sm:$0xff] %v800_v19 }
 0x331   : > { %1032 = shalt.err (!%p1029_p10)
}
 0x332   : > { %s1033_s15 = scalar_lea.hbm %s816_s21, 256  ;;  %s1037_s23 = scalar_lea.hbm %s1459_s8, 512 }
 0x333   : > { %p1034_p2 = scmp.ne.s32.totalorder %s816_s21, %s1033_s15  ;;  %p1038_p7 = scmp.lt.s32.totalorder %s816_s21, %s1459_s8 }
 0x334   : > { %p1039_p0 = scmp.lt.s32.totalorder %s1037_s23, %s1033_s15 }
 0x335   : > { %p1035_p4 = pnand %p1034_p2, %p1473_p12 }
 0x336   : > { %p1040_p6 = por %p1039_p0, %p1038_p7 }
 0x337   : > { %p1036_p9 = pneg %p1035_p4 }
 0x339   : > { %p1041_p11 = pnand %p1040_p6, %p1036_p9 }
 0x33b   : > { %1044 = shalt.err (!%p1041_p11)
}
 0x33c   : > { %919 = dma.vmem_to_hbm [thread:$0]  (%p1473_p12), %s819_s25, 256, %s816_s21, %s804_s26  }
 0x33d PF: > { %s830_s20 = sand.u32 1, %s1071_s27   ;;  %p1474_p13 = scmp.ne.s32.totalorder %s1466_s18, 0 }
 0x33e   : > { %p1475_p1 = scmp.ge.s32.totalorder %s1083_s30, 2  ;;  %s831_s24 = scalar_lea.sflag [#allocation4], %s830_s20 }
 0x340   : > { %p926_p3 = pnand %p1475_p1, %p1474_p13 }
 0x342   : > { %p927_p5 = pneg %p926_p3 }
 0x344   : > { %1066 = dma.done.wait (%p927_p5), %s831_s24, 256  }
 0x345   : > { %1068 = vsyncadd (%p927_p5), %s831_s24, 4294967040  ;;  %s1476_s12 = sld [smem:[#allocation8_spill]]  ;;  %p21_p8 = scmp.ge.s32.totalorder %s1167_s11, 4  }
 0x346   : > { %s1477_s27 = smov %s1075_s28  ;;  %s1478_s28 = smov %s1079_s29 }
 0x347   : > { %s1480_s30 = smov %s1167_s11  ;;  %23 = sbr.rel (!%p21_p8) target bundleno = 5 (0x5), region = 97 }
 0x34b   : > { %s1479_s29 = smov %s1476_s12 }
 0x34c   :  { %836 = vsyncpa [#allocation3], 1 }
 0x34d   :  { %838 = vsyncpa [#allocation3 + $0x1], 1 }
 0x34e   :  { %839 = vsyncpa [#allocation4], 1 }
 0x34f   :  { %841 = vsyncpa [#allocation4 + $0x1], 1 }

</bundles_post_ra>
